<compile_context>
chip_gen: v7x
topology: tpu7x:2x2x1
jax: 0.10.0
libtpu: 0.0.40
codegen_flags: <defaults>
</compile_context>

<pallas_src>
import functools

import jax
import jax.numpy as jnp
import numpy as np
from jax.experimental import pallas as pl
from jax.experimental.pallas import tpu as pltpu


def _round_up(x, m):
    return (x + m - 1) // m * m


def _softplus(v):
    # Explicit softplus: cheaper on the VPU than jnp.logaddexp(0, v) (no
    # isnan/where special-casing).  log1p would be marginally more accurate
    # for very negative v; plain log keeps the lowering footprint minimal.
    return jnp.maximum(v, 0.0) + jnp.log(1.0 + jnp.exp(-jnp.abs(v)))


@functools.lru_cache(maxsize=1)
def _roll_convention():
    """Calibrate pltpu.roll's rotation direction (and that it lowers) once.

    Returns "jnp" if pltpu.roll(x, s, axis)[i] == x[(i - s) % n] (same as
    jnp.roll), "neg" for the opposite direction, or None if the probe could
    not run -- in which case the gather falls back to the exact one-hot
    matmul path.
    """
    try:
        def probe(o_ref):
            row = jax.lax.broadcasted_iota(jnp.int32, (8, 128), 1).astype(jnp.float32)
            o_ref[...] = pltpu.roll(row, 1, 1)

        res = pl.pallas_call(
            probe, out_shape=jax.ShapeDtypeStruct((8, 128), jnp.float32))()
        first = float(jax.device_get(res)[0, 0])
    except Exception:   # fast path only; the general path is always available
        return None
    if first == 127.0:
        return "jnp"
    if first == 1.0:
        return "neg"
    return None


def _msg_pass_kernel(x_ref, w_ref, b_ref, *rest, R, R_pad, roll_shifts, n_matmul):
    """One batch tile per grid step.

    x_ref: (1, TB*C_in, S)        inputs; batch tile folded onto sublanes.
    w_ref: (2*R_pad, TB*C_in)     fused block-diagonal [local ; neighbor] weights.
    b_ref: (R, 1)                 channel-summed bias, tiled over the batch tile.
    rest:  [p_ref (n_matmul,S,S)] one-hot gather matrices (general path), out_ref (1,R,S).
    """
    if n_matmul > 0:
        p_ref, out_ref = rest
    else:
        (out_ref,) = rest

    w = w_ref[...]                                      # (2*R_pad, TB*C_in)
    mm_dtype = w.dtype
    x = x_ref[0].astype(mm_dtype)                       # (TB*C_in, S)

    # Fused projection for the whole batch tile: x is pushed through the MXU
    # once; rows [0:R) are the local (self) projection, rows [R_pad:R_pad+R)
    # the neighbor projection (R_pad keeps both slices sublane-aligned).
    proj = jnp.dot(w, x, preferred_element_type=jnp.float32)     # (2*R_pad, S) f32
    local_pb = proj[0:R, :] + b_ref[...]                # (R, S) f32, z-invariant
    xn = proj[R_pad:R_pad + R, :]                       # (R, S) f32

    acc = jnp.zeros_like(local_pb)

    # Fast path: global-cyclic-shift neighbors handled on the XLU
    # (no P buffer, no S^2 matmul, neighbor features stay f32).
    for shift in roll_shifts:                           # static python ints
        nb = xn if shift == 0 else pltpu.roll(xn, shift, 1)
        acc = acc + _softplus(local_pb + nb)

    # General path: arbitrary neighbor maps as one-hot gather matmuls.  Each
    # P[zi] is the stationary MXU operand, pushed once per grid step while all
    # TB*C_out rows of the batch tile stream through it.
    if n_matmul > 0:
        # NOTE: when matmul_dtype=bf16 the neighbor features see one bf16
        # rounding here (the local path stays f32); the one-hot P itself is
        # exact in bf16.  Pass matmul_dtype=jnp.float32 for bit-tight results.
        xn_mm = xn.astype(mm_dtype)
        for zi in range(n_matmul):
            nb = jnp.dot(xn_mm, p_ref[zi], preferred_element_type=jnp.float32)
            acc = acc + _softplus(local_pb + nb)

    out_ref[0] = acc.astype(out_ref.dtype)


def _vmem_estimate(tb, C_in, C_out, S, n_matmul, io_bytes, mm_bytes):
    """Rough resident-VMEM estimate (bytes) for one grid step at batch tile tb."""
    R = tb * C_out
    R_pad = _round_up(R, 8)
    K = tb * C_in
    tiles = 2 * (K * S + R * S) * io_bytes                  # double-buffered x/out tiles
    consts = 2 * (2 * R_pad * K * mm_bytes + R * 4          # fused weights + bias
                  + n_matmul * S * S * mm_bytes)            # one-hot gather matrices
    # TODO(synk): mark the grid-invariant operands (w, b, P) with
    # pipeline_mode=pl.Buffered(1) once single-buffering is supported
    # end-to-end by pallas_call; until then the estimate charges 2x for them.
    temps = (2 * R_pad + 4 * R) * S * 4 + K * S * mm_bytes  # proj/local/xn/acc/nb + x cast
    return tiles + consts + temps


def _pick_batch_tile(B, C_in, C_out, S, n_matmul, io_bytes, mm_bytes,
                     max_tile=8, vmem_budget=24 << 20):
    """Largest divisor of B within the VMEM budget, preferring an even grid
    extent (keeps both v7x TensorCores busy) and a grid extent >= 2."""
    fits = [t for t in range(1, min(B, max_tile) + 1)
            if B % t == 0
            and _vmem_estimate(t, C_in, C_out, S, n_matmul, io_bytes, mm_bytes) <= vmem_budget]
    if not fits:
        return 1
    even = [t for t in fits if (B // t) % 2 == 0]
    multi = [t for t in fits if (B // t) >= 2]
    for cand in (even, multi, fits):
        if cand:
            return max(cand)
    return 1


def msg_pass_forward(In, NNsites, Weights, bias, *, batch_tile=None,
                     matmul_dtype=jnp.bfloat16):
    """Pallas implementation of msgPassLayer.forward.

    In:      (B, C_in, S) float
    NNsites: (Z+1, S) int
    Weights: (NCh, C_out, 2*C_in)
    bias:    (NCh, C_out)
    returns: (B, C_out, S), same dtype as In.
    matmul_dtype: dtype of the MXU operands (default bf16; accumulation and
      all element-wise math stay f32).  Use jnp.float32 for bit-tight results.
    """
    B, C_in, S = In.shape
    NCh, C_out, _ = Weights.shape
    Z = NNsites.shape[0] - 1
    mm_dtype = np.dtype(In.dtype if matmul_dtype is None else matmul_dtype)
    io_bytes = In.dtype.itemsize
    mm_bytes = mm_dtype.itemsize

    # Exact refactor: softplus is applied after the per-channel sum, so the
    # channel axis of Weights/bias is pre-summed up front (in f32).
    Wsum = jnp.sum(Weights.astype(jnp.float32), axis=0)          # (C_out, 2*C_in)
    wl = Wsum[:, :C_in]                                          # local (self) part
    wn = Wsum[:, C_in:]                                          # neighbor part
    bsum = jnp.sum(bias.astype(jnp.float32), axis=0)[:, None]    # (C_out, 1)

    # ---- static neighbor-structure analysis: roll fast path -----------------
    roll_shifts = []                     # XLU-handled neighbors (static shifts)
    matmul_zs = list(range(Z))           # one-hot-matmul-handled neighbors
    if S % 128 == 0:                     # only lane-aligned rotates take the fast path
        try:
            nn_np = np.asarray(jax.device_get(NNsites))
        except Exception:
            nn_np = None                 # traced NNsites -> general path only
        if nn_np is not None:
            conv = _roll_convention()
            if conv is not None:
                base = np.arange(S, dtype=np.int64)
                shifts, keep = [], []
                for z in range(Z):
                    row = nn_np[1 + z].astype(np.int64) % S
                    k = int(row[0])
                    if np.array_equal(row, (base + k) % S):      # global cyclic shift
                        shifts.append(((-k) % S) if conv == "jnp" else (k % S))
                    else:
                        keep.append(z)
                roll_shifts, matmul_zs = shifts, keep
    n_matmul = len(matmul_zs)

    # ---- batch tile / grid ---------------------------------------------------
    if batch_tile is not None and batch_tile > 0 and B % batch_tile == 0:
        TB = batch_tile
    else:
        TB = _pick_batch_tile(B, C_in, C_out, S, n_matmul, io_bytes, mm_bytes)
    G = B // TB
    K = TB * C_in
    R = TB * C_out
    R_pad = _round_up(R, 8)

    # Fused block-diagonal projection weights: rows [0:R) local, rows
    # [R_pad:R_pad+R) neighbor (zero rows keep the in-kernel split aligned).
    eye = jnp.eye(TB, dtype=jnp.float32)
    wl_blk = jnp.kron(eye, wl)                                   # (R, K)
    wn_blk = jnp.kron(eye, wn)                                   # (R, K)
    if R_pad != R:
        zpad = jnp.zeros((R_pad - R, K), jnp.float32)
        wl_blk = jnp.concatenate([wl_blk, zpad], axis=0)
        wn_blk = jnp.concatenate([wn_blk, zpad], axis=0)
    w_fused = jnp.concatenate([wl_blk, wn_blk], axis=0).astype(mm_dtype)  # (2*R_pad, K)
    b_blk = jnp.tile(bsum, (TB, 1))                              # (R, 1) f32

    # Batch tile folded onto the sublane axis (free reshape); sites stay on lanes.
    x3 = In.reshape(G, K, S)

    in_specs = [
        pl.BlockSpec((1, K, S), lambda g: (g, 0, 0)),            # inputs, tiled over batch
        pl.BlockSpec((2 * R_pad, K), lambda g: (0, 0)),          # fused weights (grid-invariant)
        pl.BlockSpec((R, 1), lambda g: (0, 0)),                  # bias (grid-invariant)
    ]
    args = [x3, w_fused, b_blk]

    if n_matmul > 0:
        # Batch-invariant one-hot gather matrices for the non-shift neighbors:
        # P[zi, src, dst] = (NNsites[1+z, dst] == src); exact in bf16.
        nn_sel = jnp.stack([NNsites[1 + z] for z in matmul_zs]).astype(jnp.int32)
        src = jnp.arange(S, dtype=jnp.int32)
        P = (src[None, :, None] == nn_sel[:, None, :]).astype(mm_dtype)   # (n_matmul, S, S)
        in_specs.append(pl.BlockSpec((n_matmul, S, S), lambda g: (0, 0, 0)))
        args.append(P)

    out_specs = pl.BlockSpec((1, R, S), lambda g: (g, 0, 0))

    # Explicit VMEM budget (also valid for v7x's 64 MiB physical VMEM).
    est = _vmem_estimate(TB, C_in, C_out, S, n_matmul, io_bytes, mm_bytes)
    vmem_limit = int(min(max(2 * est + (4 << 20), 32 << 20), 64 << 20))

    kernel = functools.partial(
        _msg_pass_kernel, R=R, R_pad=R_pad,
        roll_shifts=tuple(int(s) for s in roll_shifts), n_matmul=n_matmul)

    out = pl.pallas_call(
        kernel,
        out_shape=jax.ShapeDtypeStruct((G, R, S), In.dtype),
        grid=(G,),
        in_specs=in_specs,
        out_specs=out_specs,
        compiler_params=pltpu.CompilerParams(
            dimension_semantics=("parallel",),
            vmem_limit_bytes=vmem_limit,
        ),
    )(*args)

    # TODO(synk): when S < 128 the (R, S) output tiles use lane-masked stores;
    # folding the batch tile onto the lane axis would make them dense at the
    # cost of a (TB*S)^2 block-diagonal gather operand -- not done here.
    return out.reshape(B, C_out, S)


def msg_pass_reference(In, NNsites, Weights, bias):
    """Pure-JAX transcription of the torch forward (for verification)."""
    B, C_in, S = In.shape
    Z = NNsites.shape[0] - 1
    out = jnp.zeros((B, Weights.shape[1], S), In.dtype)
    total = jnp.zeros((B, 2 * C_in, S), In.dtype)
    total = total.at[:, :C_in, :].set(In)
    for z in range(Z):
        total = total.at[:, C_in:, :].set(In[:, :, NNsites[1 + z]])
        o = jnp.tensordot(total, Weights, axes=([1], [2])) + bias[None, None]
        o = jnp.sum(jnp.swapaxes(o, 1, 3), axis=2)
        out = out + jax.nn.softplus(o)
    return out


def _make_lattice_nnsites(Lx, Ly):
    """NNsites rows: [self, +x, -x, +y, -y] for a periodic Lx x Ly lattice."""
    S = Lx * Ly
    sites = jnp.arange(S, dtype=jnp.int32).reshape(Lx, Ly)
    return jnp.stack(
        [sites,
         jnp.roll(sites, -1, axis=1), jnp.roll(sites, 1, axis=1),
         jnp.roll(sites, -1, axis=0), jnp.roll(sites, 1, axis=0)],
        axis=0).reshape(5, S)


if __name__ == "__main__":
    root = jax.random.PRNGKey(0)
    k1, k2, k3, k4, k5, k6 = jax.random.split(root, 6)
    C_in, C_out, NCh = 4, 5, 3
    mean, std = 1.0, 0.1

    # --- case 1: small 4x4 periodic lattice (S=16, Z=4), general gather path ---
    B1 = 2
    NN1 = _make_lattice_nnsites(4, 4)
    S1 = NN1.shape[1]
    W1 = mean + std * jax.random.normal(k1, (NCh, C_out, 2 * C_in), jnp.float32)
    b1 = mean + std * jax.random.normal(k2, (NCh, C_out), jnp.float32)
    In1 = jax.random.normal(k3, (B1, C_in, S1), jnp.float32)

    out1 = jax.block_until_ready(
        msg_pass_forward(In1, NN1, W1, b1, matmul_dtype=jnp.float32))
    ref1 = msg_pass_reference(In1, NN1, W1, b1)
    assert out1.shape == (B1, C_out, S1), out1.shape
    if not bool(jnp.allclose(out1, ref1, rtol=1e-4, atol=1e-4)):
        raise AssertionError("general (one-hot gather) path disagrees with reference")

    # --- case 2: 8x16 periodic lattice (S=128) -- roll fast path + matmul path ---
    B2 = 4
    NN2 = _make_lattice_nnsites(8, 16)   # +/-y neighbors are global shifts of +/-16
    S2 = NN2.shape[1]
    W2 = mean + std * jax.random.normal(k4, (NCh, C_out, 2 * C_in), jnp.float32)
    b2 = mean + std * jax.random.normal(k5, (NCh, C_out), jnp.float32)
    In2 = jax.random.normal(k6, (B2, C_in, S2), jnp.float32)

    ref2 = msg_pass_reference(In2, NN2, W2, b2)
    out2_f32 = jax.block_until_ready(
        msg_pass_forward(In2, NN2, W2, b2, matmul_dtype=jnp.float32))
    assert out2_f32.shape == (B2, C_out, S2), out2_f32.shape
    if not bool(jnp.allclose(out2_f32, ref2, rtol=1e-4, atol=1e-4)):
        raise AssertionError("roll fast path (f32) disagrees with reference")

    # Default bf16 MXU operands: ~2^-8 relative rounding per product, so the
    # comparison against the f32 kernel is intentionally loose.
    out2_bf16 = jax.block_until_ready(msg_pass_forward(In2, NN2, W2, b2))
    if not bool(jnp.allclose(out2_bf16, out2_f32, rtol=5e-2, atol=8e-1)):
        raise AssertionError("bf16 MXU path deviates too much from the f32 path")

    print("KERNEL_OK")
</pallas_src>

<mosaic_0001>
module attributes {stable_mosaic.version = 11 : i64} {
  func.func @_msg_pass_kernel(%arg0: i32, %arg1: memref<1x4x16xf32, #tpu.memory_space<vmem>>, %arg2: memref<16x4xf32, #tpu.memory_space<vmem>>, %arg3: memref<5x1xf32, #tpu.memory_space<vmem>>, %arg4: memref<4x16x16xf32, #tpu.memory_space<vmem>>, %arg5: memref<1x5x16xf32, #tpu.memory_space<vmem>>) attributes {dimension_semantics = [#tpu.dimension_semantics<parallel>], iteration_bounds = array<i64: 2>, scalar_prefetch = 0 : i64, scratch_operands = 0 : i64, tpu.core_type = #tpu.core_type<tc>, window_params = [{transform_indices = @transform_0, window_bounds = array<i64: 1, 4, 16>}, {pipeline_mode = #tpu.pipeline_mode<synchronous>, transform_indices = @transform_1, window_bounds = array<i64: 16, 4>}, {pipeline_mode = #tpu.pipeline_mode<synchronous>, transform_indices = @transform_2, window_bounds = array<i64: 5, 1>}, {pipeline_mode = #tpu.pipeline_mode<synchronous>, transform_indices = @transform_3, window_bounds = array<i64: 4, 16, 16>}, {transform_indices = @transform_4, window_bounds = array<i64: 1, 5, 16>}]} {
    %c0 = arith.constant 0 : index
    %c0_0 = arith.constant 0 : index
    %0 = vector.load %arg2[%c0, %c0_0] : memref<16x4xf32, #tpu.memory_space<vmem>>, vector<16x4xf32>
    %c0_1 = arith.constant 0 : index
    %c0_2 = arith.constant 0 : index
    %c0_3 = arith.constant 0 : index
    %1 = vector.load %arg1[%c0_1, %c0_2, %c0_3] : memref<1x4x16xf32, #tpu.memory_space<vmem>>, vector<1x4x16xf32>
    %2 = vector.shape_cast %1 : vector<1x4x16xf32> to vector<4x16xf32>
    %cst = arith.constant dense<0.000000e+00> : vector<16x16xf32>
    %3 = tpu.matmul %0, %2, %cst {dimension_numbers = #tpu.dot_dimension_numbers<[1], [0], [0], [1], [0, 0, 1, 1], [], []>} : vector<16x4xf32>, vector<4x16xf32>, vector<16x16xf32> -> vector<16x16xf32>
    %4 = vector.extract_strided_slice %3 {offsets = [0, 0], sizes = [5, 16], strides = [1, 1]} : vector<16x16xf32> to vector<5x16xf32>
    %c0_4 = arith.constant 0 : index
    %c0_5 = arith.constant 0 : index
    %5 = vector.load %arg3[%c0_4, %c0_5] : memref<5x1xf32, #tpu.memory_space<vmem>>, vector<5x1xf32>
    %6 = vector.broadcast %5 : vector<5x1xf32> to vector<5x16xf32>
    %7 = arith.addf %4, %6 : vector<5x16xf32>
    %8 = vector.extract_strided_slice %3 {offsets = [8, 0], sizes = [5, 16], strides = [1, 1]} : vector<16x16xf32> to vector<5x16xf32>
    %cst_6 = arith.constant 0.000000e+00 : f32
    %9 = vector.broadcast %cst_6 : f32 to vector<5x16xf32>
    %c0_7 = arith.constant 0 : index
    %c0_8 = arith.constant 0 : index
    %c0_9 = arith.constant 0 : index
    %10 = vector.load %arg4[%c0_7, %c0_8, %c0_9] : memref<4x16x16xf32, #tpu.memory_space<vmem>>, vector<1x16x16xf32>
    %11 = vector.shape_cast %10 : vector<1x16x16xf32> to vector<16x16xf32>
    %cst_10 = arith.constant dense<0.000000e+00> : vector<5x16xf32>
    %12 = tpu.matmul %8, %11, %cst_10 {dimension_numbers = #tpu.dot_dimension_numbers<[1], [0], [0], [1], [0, 0, 1, 1], [], []>} : vector<5x16xf32>, vector<16x16xf32>, vector<5x16xf32> -> vector<5x16xf32>
    %13 = arith.addf %7, %12 : vector<5x16xf32>
    %cst_11 = arith.constant 0.000000e+00 : f32
    %14 = vector.broadcast %cst_11 : f32 to vector<5x16xf32>
    %15 = arith.maximumf %13, %14 : vector<5x16xf32>
    %16 = math.absf %13 : vector<5x16xf32>
    %cst_12 = arith.constant 0.000000e+00 : f32
    %17 = vector.broadcast %cst_12 : f32 to vector<5x16xf32>
    %18 = arith.subf %17, %16 : vector<5x16xf32>
    %19 = math.exp %18 : vector<5x16xf32>
    %cst_13 = arith.constant 1.000000e+00 : f32
    %20 = vector.broadcast %cst_13 : f32 to vector<5x16xf32>
    %21 = arith.addf %20, %19 : vector<5x16xf32>
    %22 = math.log %21 : vector<5x16xf32>
    %23 = arith.addf %15, %22 : vector<5x16xf32>
    %24 = arith.addf %9, %23 : vector<5x16xf32>
    %c1 = arith.constant 1 : index
    %c0_14 = arith.constant 0 : index
    %c0_15 = arith.constant 0 : index
    %25 = vector.load %arg4[%c1, %c0_14, %c0_15] : memref<4x16x16xf32, #tpu.memory_space<vmem>>, vector<1x16x16xf32>
    %26 = vector.shape_cast %25 : vector<1x16x16xf32> to vector<16x16xf32>
    %cst_16 = arith.constant dense<0.000000e+00> : vector<5x16xf32>
    %27 = tpu.matmul %8, %26, %cst_16 {dimension_numbers = #tpu.dot_dimension_numbers<[1], [0], [0], [1], [0, 0, 1, 1], [], []>} : vector<5x16xf32>, vector<16x16xf32>, vector<5x16xf32> -> vector<5x16xf32>
    %28 = arith.addf %7, %27 : vector<5x16xf32>
    %cst_17 = arith.constant 0.000000e+00 : f32
    %29 = vector.broadcast %cst_17 : f32 to vector<5x16xf32>
    %30 = arith.maximumf %28, %29 : vector<5x16xf32>
    %31 = math.absf %28 : vector<5x16xf32>
    %cst_18 = arith.constant 0.000000e+00 : f32
    %32 = vector.broadcast %cst_18 : f32 to vector<5x16xf32>
    %33 = arith.subf %32, %31 : vector<5x16xf32>
    %34 = math.exp %33 : vector<5x16xf32>
    %cst_19 = arith.constant 1.000000e+00 : f32
    %35 = vector.broadcast %cst_19 : f32 to vector<5x16xf32>
    %36 = arith.addf %35, %34 : vector<5x16xf32>
    %37 = math.log %36 : vector<5x16xf32>
    %38 = arith.addf %30, %37 : vector<5x16xf32>
    %39 = arith.addf %24, %38 : vector<5x16xf32>
    %c2 = arith.constant 2 : index
    %c0_20 = arith.constant 0 : index
    %c0_21 = arith.constant 0 : index
    %40 = vector.load %arg4[%c2, %c0_20, %c0_21] : memref<4x16x16xf32, #tpu.memory_space<vmem>>, vector<1x16x16xf32>
    %41 = vector.shape_cast %40 : vector<1x16x16xf32> to vector<16x16xf32>
    %cst_22 = arith.constant dense<0.000000e+00> : vector<5x16xf32>
    %42 = tpu.matmul %8, %41, %cst_22 {dimension_numbers = #tpu.dot_dimension_numbers<[1], [0], [0], [1], [0, 0, 1, 1], [], []>} : vector<5x16xf32>, vector<16x16xf32>, vector<5x16xf32> -> vector<5x16xf32>
    %43 = arith.addf %7, %42 : vector<5x16xf32>
    %cst_23 = arith.constant 0.000000e+00 : f32
    %44 = vector.broadcast %cst_23 : f32 to vector<5x16xf32>
    %45 = arith.maximumf %43, %44 : vector<5x16xf32>
    %46 = math.absf %43 : vector<5x16xf32>
    %cst_24 = arith.constant 0.000000e+00 : f32
    %47 = vector.broadcast %cst_24 : f32 to vector<5x16xf32>
    %48 = arith.subf %47, %46 : vector<5x16xf32>
    %49 = math.exp %48 : vector<5x16xf32>
    %cst_25 = arith.constant 1.000000e+00 : f32
    %50 = vector.broadcast %cst_25 : f32 to vector<5x16xf32>
    %51 = arith.addf %50, %49 : vector<5x16xf32>
    %52 = math.log %51 : vector<5x16xf32>
    %53 = arith.addf %45, %52 : vector<5x16xf32>
    %54 = arith.addf %39, %53 : vector<5x16xf32>
    %c3 = arith.constant 3 : index
    %c0_26 = arith.constant 0 : index
    %c0_27 = arith.constant 0 : index
    %55 = vector.load %arg4[%c3, %c0_26, %c0_27] : memref<4x16x16xf32, #tpu.memory_space<vmem>>, vector<1x16x16xf32>
    %56 = vector.shape_cast %55 : vector<1x16x16xf32> to vector<16x16xf32>
    %cst_28 = arith.constant dense<0.000000e+00> : vector<5x16xf32>
    %57 = tpu.matmul %8, %56, %cst_28 {dimension_numbers = #tpu.dot_dimension_numbers<[1], [0], [0], [1], [0, 0, 1, 1], [], []>} : vector<5x16xf32>, vector<16x16xf32>, vector<5x16xf32> -> vector<5x16xf32>
    %58 = arith.addf %7, %57 : vector<5x16xf32>
    %cst_29 = arith.constant 0.000000e+00 : f32
    %59 = vector.broadcast %cst_29 : f32 to vector<5x16xf32>
    %60 = arith.maximumf %58, %59 : vector<5x16xf32>
    %61 = math.absf %58 : vector<5x16xf32>
    %cst_30 = arith.constant 0.000000e+00 : f32
    %62 = vector.broadcast %cst_30 : f32 to vector<5x16xf32>
    %63 = arith.subf %62, %61 : vector<5x16xf32>
    %64 = math.exp %63 : vector<5x16xf32>
    %cst_31 = arith.constant 1.000000e+00 : f32
    %65 = vector.broadcast %cst_31 : f32 to vector<5x16xf32>
    %66 = arith.addf %65, %64 : vector<5x16xf32>
    %67 = math.log %66 : vector<5x16xf32>
    %68 = arith.addf %60, %67 : vector<5x16xf32>
    %69 = arith.addf %54, %68 : vector<5x16xf32>
    %c0_32 = arith.constant 0 : index
    %c0_33 = arith.constant 0 : index
    %c0_34 = arith.constant 0 : index
    %70 = vector.load %arg5[%c0_32, %c0_33, %c0_34] : memref<1x5x16xf32, #tpu.memory_space<vmem>>, vector<1x5x16xf32>
    %71 = vector.shape_cast %70 : vector<1x5x16xf32> to vector<5x16xf32>
    %72 = vector.shape_cast %69 : vector<5x16xf32> to vector<1x5x16xf32>
    tpu.vector_store %arg5[%c0_32, %c0_33, %c0_34], %72 {strides = array<i32>} : memref<1x5x16xf32, #tpu.memory_space<vmem>>, vector<1x5x16xf32>,
    return
  }
  func.func @transform_0(%arg0: i32) -> (i32, i32, i32) {
    %c0_i32 = arith.constant 0 : i32
    %c0_i32_0 = arith.constant 0 : i32
    %c0_i32_1 = arith.constant 0 : i32
    return %arg0, %c0_i32, %c0_i32_0 : i32, i32, i32
  }
  func.func @transform_1(%arg0: i32) -> (i32, i32) {
    %c0_i32 = arith.constant 0 : i32
    %c0_i32_0 = arith.constant 0 : i32
    %c0_i32_1 = arith.constant 0 : i32
    return %c0_i32, %c0_i32_0 : i32, i32
  }
  func.func @transform_2(%arg0: i32) -> (i32, i32) {
    %c0_i32 = arith.constant 0 : i32
    %c0_i32_0 = arith.constant 0 : i32
    %c0_i32_1 = arith.constant 0 : i32
    return %c0_i32, %c0_i32_0 : i32, i32
  }
  func.func @transform_3(%arg0: i32) -> (i32, i32, i32) {
    %c0_i32 = arith.constant 0 : i32
    %c0_i32_0 = arith.constant 0 : i32
    %c0_i32_1 = arith.constant 0 : i32
    %c0_i32_2 = arith.constant 0 : i32
    return %c0_i32, %c0_i32_0, %c0_i32_1 : i32, i32, i32
  }
  func.func @transform_4(%arg0: i32) -> (i32, i32, i32) {
    %c0_i32 = arith.constant 0 : i32
    %c0_i32_0 = arith.constant 0 : i32
    %c0_i32_1 = arith.constant 0 : i32
    return %arg0, %c0_i32, %c0_i32_0 : i32, i32, i32
  }
}

</mosaic_0001>

<bundles_post_ra>
// kernel: tpu_custom_call.1
= control target key start
LH: loop header
LB: loop body
LE: loop exit
PB: predicated region body
PF: predicated region fallthrough
CT: control target
= control target key end

     0   :  { %9 = vsyncpa [#allocation3], 0  ;;  %s902_s15 = smov 0   ;;  %s975_s0 = inlined_call_operand.vmem [shape: f32[2,4,16], index: 0, kind: input, shape index: {}]   ;;  %s976_s1 = inlined_call_operand.vmem [shape: f32[16,4], index: 1, kind: input, shape index: {}]   ;;  %s977_s2 = inlined_call_operand.vmem [shape: f32[5,1], index: 2, kind: input, shape index: {}]   ;;  %s978_s3 = inlined_call_operand.hbm [shape: f32[4,16,16], index: 3, kind: input, shape index: {}]   ;;  %s979_s4 = inlined_call_operand.vmem [shape: f32[2,5,16], index: 4, kind: output, shape index: {}]  }
   0x1 LB: > { %s908_s16 = sadd.s32 4294967295, %s868_s15   ;;  %p712_p0 = scmp.ge.s32.totalorder %s868_s15, 1  ;;  %s868_s15 = sphi %s902_s15, %s15_s15  }
   0x2   : > { %p135_p1 = scmp.lt.s32.totalorder %s868_s15, 3  ;;  %s870_s17 = smov [#allocation2]  }
   0x3   : > { %s153_s18 = sshll.u32 %s870_s17, 4  ;;  %p980_p3 = scmp.eq.s32.totalorder %s908_s16, 0  ;;  %s154_s18 = int_to_ptr.vmem [resolvable:$true] %s153_s18 }
   0x4   : > { %p912_p2 = pnand %p712_p0, %p135_p1  ;;  %s830_s23 = scalar_lea.hbm %s978_s3, 1024 }
   0x5   : > { %p831_p6 = scmp.ne.s32.totalorder %s978_s3, %s830_s23  ;;  %p837_p10 = scmp.lt.u32.totalorder %s830_s23, %s978_s3 }
   0x6   : > { %s982_s19 = scalar_select %p912_p2, 1, 0 }
   0x7   : > { %p792_p4 = pneg %p912_p2 }
   0x9   : > { %p921_p5 = pnand %p980_p3, %p792_p4 }
   0xb   : > { %p832_p7 = pneg %p921_p5 }
   0xd   : > { %p833_p8 = pnand %p832_p7, %p831_p6 }
   0xf   : > { %p834_p9 = pneg %p833_p8 }
  0x11   : > { %p839_p11 = pnand %p837_p10, %p834_p9 }
  0x13   : > { %842 = shalt.err (!%p839_p11)
}
  0x14   : > { %s843_s28 = scalar_lea.vmem %s154_s18, 1024  ;;  %p851_p1 = scmp.lt.s32.totalorder %s154_s18, %s154_s18 }
  0x15   : > { %p844_p12 = scmp.ne.s32.totalorder %s154_s18, %s843_s28  ;;  %p852_p4 = scmp.lt.s32.totalorder %s843_s28, %s843_s28 }
  0x17   : > { %p846_p13 = pnand %p844_p12, %p832_p7  ;;  %p853_p3 = por %p852_p4, %p851_p1 }
  0x19   : > { %p847_p0 = pneg %p846_p13 }
  0x1b   : > { %p854_p2 = pnand %p853_p3, %p847_p0 }
  0x1d   : > { %857 = shalt.err (!%p854_p2)
}
  0x1e   : > { %s871_s29 = smov 128   ;;  %s872_s30 = smov 8  }
  0x1f   : > { %795 = dma.hbm_to_vmem [thread:$0]  (!%p921_p5), %s978_s3, 1024, %s154_s18, [#allocation3], %s871_s29, %s871_s29, %s872_s30  }
  0x20   : > { %p984_p6 = scmp.ne.s32.totalorder %s982_s19, 0 }
  0x21   : > { %p985_p8 = scmp.eq.s32.totalorder (!%p984_p6), %s908_s16, 0 }
  0x22   : > { %176 = sbr.rel (%p984_p6) target bundleno = 519 (0x207), region = 36 }
  0x29   : > { %863 = dma.done.wait (%p985_p8), [#allocation3], 1024   ;;  %p986_p7 = pmov %p985_p8 }
  0x2a   : > { %p200_p2 = scmp.lt.s32.totalorder %s908_s16, 1  ;;  %v873_v0 = vmov 0   ;;  %v874_v1 = vmov 0.0|0.0   ;;  %vm218_vm0 = vcmask 1043456   ;;  %vm211_vm1 = vcmask 31744   ;;  %v208_v3 = vld [vmem:[%s976_s1] sm:$0xff] }
  0x2b   : > { %865 = vsyncadd (%p986_p7), [#allocation3], 4294966272  ;;  %813 = vset.pattern.permute.xlu0 %v873_v0  ;;  %776 = vmatprep.subr.bf16.mxu1 %v874_v1  ;;  %v209_v4 = vld [vmem:[%s976_s1 + $0x8] sm:$0xff]  ;;  %v297_v5 = vld [vmem:[%s977_s2] sm:$0x1f]  ;;  %vm875_vm2 = vmmov 0  }
  0x2c   : > { %s988_s16 = smov (!%p200_p2, %s908_s16), 1  ;;  %745 = vmatprep.mubr.msk.f32.mxu0 %vm211_vm1, %v208_v3  ;;  %v304_v6 = vld [vmem:[#allocation2] sm:$0xff]  ;;  %v305_v7 = vld [vmem:[#allocation2 + $0x8] sm:$0xff]  ;;  %300 = vperm.xlu0 %813, %v297_v5   ;;  %v392_v9 = vld [vmem:[#allocation2 + $0x10] sm:$0xff]  ;;  %v876_v12 = vmov 0.0   ;;  %vm306_vm3 = vcmask 130048  }
  0x2d   : > { %s717_s7 = sshll.u32 %s988_s16, 2  ;;  %v777_v8 = vpack.c.bf16 %v305_v7, %v304_v6  ;;  %v393_v10 = vld [vmem:[#allocation2 + $0x18] sm:$0xff]  ;;  %752 = vmatprep.mubr.msk.f32.mxu1 %vm875_vm2, %v876_v12  ;;  %v476_v13 = vld [vmem:[#allocation2 + $0x20] sm:$0xff]  ;;  %v477_v14 = vld [vmem:[#allocation2 + $0x28] sm:$0xff]  ;;  %s718_s19 = sshll.u32 %s988_s16, 3  ;;  %vm643_vm4 = vcmask 126976  }
  0x2e   : > { %s203_s10 = scalar_lea.vmem %s975_s0, %s717_s7  ;;  %v780_v11 = vpack.c.bf16 %v393_v10, %v392_v9  ;;  %v560_v15 = vld [vmem:[#allocation2 + $0x30] sm:$0xff]  ;;  %v561_v16 = vld [vmem:[#allocation2 + $0x38] sm:$0xff]  ;;  %v783_v17 = vpack.c.bf16 %v477_v14, %v476_v13  ;;  %s207_s22 = scalar_lea.vmem %s979_s4, %s718_s19 }
  0x2f   : > { %v210_v2 = vld [vmem:[%s203_s10] sm:$0xf]  ;;  %778 = vmatpush3.bf16.msra.mxu1 %v777_v8  ;;  %v786_v18 = vpack.c.bf16 %v561_v16, %v560_v15 }
  0x30   : > { %743 = vmatprep.subr.msk.mxu0 %vm218_vm0, %v210_v2  ;;  %782 = vmatprep.subr.bf16.mxu1 %v874_v1 }
  0x31   : > { %744 = vmatpush3.msk.msra.mxu0 %vm218_vm0, %v210_v2 }
  0x32   : > { %746 = vmatmul.mubr.msk.f32.vlgmr.msra.gmra.mrb[0].mxu0 %vm211_vm1, %v209_v4  ;;  %779 = vmatprep.subr.bf16.mxu0 %v874_v1 }
  0x33   : > { %781 = vmatpush3.bf16.msra.mxu0 %v780_v11  ;;  %759 = vmatprep.mubr.msk.f32.mxu0 %vm875_vm2, %v876_v12 }
  0x34   : > { %785 = vmatprep.subr.bf16.mxu0 %v874_v1 }
  0xab   : > { %v301_v21 = vpop.permute.xlu0 %300 }
 0x105   : > { %v747_v19 = vpop.f32.mrb[0].mxu0 }
 0x106   : > { %v288_v20 = vpop.f32.mrb[1].mxu0  ;;  %753 = vmatmul.mubr.msk.f32.vlgmr.msra.gmra.mrb[0].mxu1 %vm306_vm3, %v747_v19  ;;  %760 = vmatmul.mubr.msk.f32.vlgmr.msra.gmra.mrb[2].mxu0 %vm306_vm3, %v747_v19 }
 0x107   : > { %784 = vmatpush3.bf16.msra.mxu1 %v783_v17  ;;  %787 = vmatpush3.bf16.msra.mxu0 %v786_v18  ;;  %v303_v22 = vadd.f32 %v301_v21, %v288_v20 }
 0x108   : > { %766 = vmatprep.mubr.msk.f32.mxu1 %vm875_vm2, %v876_v12  ;;  %773 = vmatprep.mubr.msk.f32.mxu0 %vm875_vm2, %v876_v12 }
 0x10a   : > { %767 = vmatmul.mubr.msk.f32.vlgmr.msra.gmra.mrb[2].mxu1 %vm306_vm3, %v747_v19  ;;  %774 = vmatmul.mubr.msk.f32.vlgmr.msra.gmra.mrb[4].mxu0 %vm306_vm3, %v747_v19 }
 0x1d9   : > { %v376_v23 = vpop.f32.mrb[0].mxu1  ;;  %v460_v24 = vpop.f32.mrb[2].mxu0 }
 0x1da   : > { %v380_v25 = vadd.f32 %v376_v23, %v303_v22  ;;  %v464_v26 = vadd.f32 %v460_v24, %v303_v22  ;;  %v754_v27 = vpop.f32.mrb[1].mxu1  ;;  %v761_v28 = vpop.f32.mrb[3].mxu0 }
 0x1dc   : > { %v382_v29 = vand.u32 2147483647, %v380_v25  ;;  %v466_v30 = vand.u32 2147483647, %v464_v26  ;;  %v381_v57 = vmax.f32 %v380_v25, 0.0  ;;  %v465_v59 = vmax.f32 %v464_v26, 0.0 }
 0x1dd   : > { %v544_v31 = vpop.f32.mrb[2].mxu1  ;;  %v628_v32 = vpop.f32.mrb[4].mxu0 }
 0x1de   : > { %v383_v33 = vsub.f32 0.0, %v382_v29  ;;  %v467_v34 = vsub.f32 0.0, %v466_v30  ;;  %v548_v35 = vadd.f32 %v544_v31, %v303_v22  ;;  %v632_v36 = vadd.f32 %v628_v32, %v303_v22  ;;  %v768_v37 = vpop.f32.mrb[3].mxu1  ;;  %v775_v38 = vpop.f32.mrb[5].mxu0 }
 0x1e0   : > { %v384_v39 = vmul.f32 1.442695, %v383_v33  ;;  %v468_v40 = vmul.f32 1.442695, %v467_v34  ;;  %v550_v41 = vand.u32 2147483647, %v548_v35 }
 0x1e1   : > { %v634_v42 = vand.u32 2147483647, %v632_v36  ;;  %v549_v2 = vmax.f32 %v548_v35, 0.0  ;;  %v633_v6 = vmax.f32 %v632_v36, 0.0 }
 0x1e2   : > { %814 = vpow2.f32 %v384_v39  ;;  %v551_v43 = vsub.f32 0.0, %v550_v41 }
 0x1e3   : > { %816 = vpow2.f32 %v468_v40  ;;  %v635_v44 = vsub.f32 0.0, %v634_v42 }
 0x1e4   : > { %v552_v45 = vmul.f32 1.442695, %v551_v43 }
 0x1e5   : > { %v636_v46 = vmul.f32 1.442695, %v635_v44 }
 0x1e6   : > { %818 = vpow2.f32 %v552_v45 }
 0x1e7   : > { %820 = vpow2.f32 %v636_v46 }
 0x1ec   : > { %v815_v47 = vpop.eup %814 }
 0x1ed   : > { %v817_v48 = vpop.eup %816  ;;  %v386_v49 = vadd.f32 1.0, %v815_v47 }
 0x1ee   : > { %v470_v50 = vadd.f32 1.0, %v817_v48 }
 0x1ef   : > { %822 = vlog2.f32 %v386_v49 }
 0x1f0   : > { %824 = vlog2.f32 %v470_v50  ;;  %v819_v51 = vpop.eup %818 }
 0x1f1   : > { %v821_v52 = vpop.eup %820  ;;  %v554_v53 = vadd.f32 1.0, %v819_v51 }
 0x1f2   : > { %v638_v54 = vadd.f32 1.0, %v821_v52 }
 0x1f3   : > { %826 = vlog2.f32 %v554_v53 }
 0x1f4   : > { %828 = vlog2.f32 %v638_v54 }
 0x1f9   : > { %v823_v55 = vpop.eup %822 }
 0x1fa   : > { %v825_v56 = vpop.eup %824  ;;  %v388_v58 = vmul.f32 0.6931472, %v823_v55 }
 0x1fb   : > { %v472_v60 = vmul.f32 0.6931472, %v825_v56 }
 0x1fc   : > { %v389_v61 = vadd.f32 %v388_v58, %v381_v57 }
 0x1fd   : > { %v473_v62 = vadd.f32 %v472_v60, %v465_v59  ;;  %v827_v63 = vpop.eup %826 }
 0x1fe   : > { %v829_v0 = vpop.eup %828  ;;  %v556_v3 = vmul.f32 0.6931472, %v827_v63 }
 0x1ff   : > { %v474_v1 = vadd.f32 %v473_v62, %v389_v61  ;;  %v640_v4 = vmul.f32 0.6931472, %v829_v0 }
 0x200   : > { %v557_v5 = vadd.f32 %v556_v3, %v549_v2 }
 0x201   : > { %v641_v8 = vadd.f32 %v640_v4, %v633_v6 }
 0x202   : > { %v558_v7 = vadd.f32 %v557_v5, %v474_v1 }
 0x204   : > { %v642_v9 = vadd.f32 %v641_v8, %v558_v7 }
 0x206   : > { %644 = vst.msk [vmem:[%s207_s22] sm:$0x1f] %vm643_vm4, %v642_v9 }
 0x207 PF: > { %s15_s15 = sadd.s32 1, %s868_s15  }
 0x208   : > { %p12_p3 = scmp.ge.s32.totalorder %s15_s15, 4  }
 0x20a   :  { %14 = sbr.rel (!%p12_p3) target bundleno = 1 (0x1), region = 74 }
 0x211   :  { %664 = vsyncpa [#allocation3], 1 }
 0x212   :  { %666 = vsyncpa [#allocation3 + $0x1], 1 }

</bundles_post_ra>
